<compile_context>
chip_gen: v6e
topology: v6e:2x2x1
jax: 0.10.0
libtpu: 0.0.40
codegen_flags: <defaults>
</compile_context>

<pallas_src>
import jax
import jax.numpy as jnp
from jax.experimental import pallas as pl
from jax.experimental.pallas import tpu as pltpu


def _round_up(x, m):
    return ((x + m - 1) // m) * m


def _tpu_tile_defaults():
    """Per-generation tile defaults: (tm, tn, tk, tn_align)."""
    try:
        kind = jax.devices()[0].device_kind.lower()
    except Exception:  # pragma: no cover - defensive only
        kind = ""
    small_mxu = any(t in kind for t in ("v2", "v3", "v4", "v5"))
    if small_mxu:
        # v5e-class: 4x128^2 MXU, 16 MiB scoped VMEM default.
        # 512^3 tiles -> ~4-6 MiB VMEM, intensity 256 FLOP/B (>= ~240 crossover).
        return 512, 512, 512, 128
    # v6e / v7x class: 2x256^2 MXU, 32 MiB scoped VMEM default.
    # 1024^3 tiles -> ~18-20 MiB VMEM, intensity 512 FLOP/B. Fits v7x's 64 MiB
    # physical VMEM without any vmem_limit_bytes override.
    return 1024, 1024, 1024, 256


def _lora_bf16_linear_kernel(x_ref, wt_ref, bias_ref, at_ref, bt_ref, o_ref,
                             acc_ref, ax_ref, axb_ref):
    # x_ref:    [tm, tk] bf16   activations tile
    # wt_ref:   [tk, tn] bf16   base weight, pre-transposed (W^T)
    # bias_ref: [1,  tn] bf16   base bias tile
    # at_ref:   [Hp, R ] bf16   lora_A^T, VMEM-resident (fetched once)
    # bt_ref:   [R,  tn] bf16   lora_B^T pre-scaled by `scaling`
    # o_ref:    [tm, tn] bf16   output tile
    # acc_ref:  [tm, tn] f32    base GEMM accumulator (persists over k)
    # ax_ref:   [tm, R ] f32    x @ A^T accumulator (persists over j and k)
    # axb_ref:  [tm, R ] bf16   cached bf16 cast of ax (written once per M-tile)
    j = pl.program_id(1)
    k = pl.program_id(2)
    nk = pl.num_programs(2)
    tk = x_ref.shape[1]

    @pl.when(k == 0)
    def _():
        acc_ref[...] = jnp.zeros_like(acc_ref)

    @pl.when((j == 0) & (k == 0))
    def _():
        ax_ref[...] = jnp.zeros_like(ax_ref)

    x = x_ref[...]

    # Base GEMM: MXU matmul, f32 accumulation, contraction dim on sublanes.
    acc_ref[...] += jnp.dot(x, wt_ref[...], preferred_element_type=jnp.float32)

    # LoRA-A projection: only while j == 0; A^T is resident, slice the k-chunk.
    @pl.when(j == 0)
    def _():
        off = pl.multiple_of(k * tk, tk)
        a_tile = at_ref[pl.ds(off, tk), :]
        ax_ref[...] += jnp.dot(x, a_tile, preferred_element_type=jnp.float32)

    # Cache the bf16 cast of the finished x@A^T once per M-tile.
    @pl.when((j == 0) & (k == nk - 1))
    def _():
        axb_ref[...] = ax_ref[...].astype(jnp.bfloat16)

    # Finalize: bias + LoRA-B projection + single bf16 cast at the store.
    @pl.when(k == nk - 1)
    def _():
        lora = jnp.dot(axb_ref[...], bt_ref[...], preferred_element_type=jnp.float32)
        o_ref[...] = (acc_ref[...]
                      + bias_ref[...].astype(jnp.float32)
                      + lora).astype(jnp.bfloat16)


def prepare_lora_bf16_weights(base_weight, base_bias, lora_a, lora_b, scaling,
                              *, tn=None, tk=None):
    """One-time weight prep (transpose, bf16 cast, scaling fold, zero padding).

    Hoist this out of the per-call path and cache the result: for single
    inference calls the [O, H] transpose/cast costs as much HBM traffic as the
    kernel itself.
    """
    O, H = base_weight.shape
    R = lora_a.shape[0]
    _, tn_def, tk_def, tn_align = _tpu_tile_defaults()
    if tn is None:
        tn = min(tn_def, _round_up(O, tn_align))
    if tk is None:
        tk = min(tk_def, _round_up(H, 256))
    Op, Hp = _round_up(O, tn), _round_up(H, tk)

    wT = jnp.pad(base_weight.T.astype(jnp.bfloat16), ((0, Hp - H), (0, Op - O)))
    aT = jnp.pad(lora_a.T.astype(jnp.bfloat16), ((0, Hp - H), (0, 0)))
    bT = jnp.pad((lora_b.astype(jnp.float32) * float(scaling)).T.astype(jnp.bfloat16),
                 ((0, 0), (0, Op - O)))
    bias = jnp.pad(base_bias.astype(jnp.bfloat16).reshape(1, O),
                   ((0, 0), (0, Op - O)))
    return dict(wT=wT, aT=aT, bT=bT, bias=bias, O=O, H=H, R=R, tn=tn, tk=tk)


def lora_bf16_linear_prepared(x, prep, *, tm=None):
    """Apply the kernel using prepared (transposed / padded / pre-scaled) weights."""
    orig_shape = x.shape
    H, O, R = prep["H"], prep["O"], prep["R"]
    tn, tk = prep["tn"], prep["tk"]
    Hp, Op = prep["wT"].shape

    x2d = x.reshape(-1, H).astype(jnp.bfloat16)          # autocast to bf16
    M = x2d.shape[0]

    tm_def, _, _, _ = _tpu_tile_defaults()
    m_aligned = _round_up(M, 16)                          # bf16 sublane packing
    if tm is None:
        tm = min(tm_def, m_aligned)
    Mp = _round_up(M, tm)

    x_p = jnp.pad(x2d, ((0, Mp - M), (0, Hp - H)))
    grid = (Mp // tm, Op // tn, Hp // tk)

    out = pl.pallas_call(
        _lora_bf16_linear_kernel,
        out_shape=jax.ShapeDtypeStruct((Mp, Op), jnp.bfloat16),
        grid_spec=pltpu.PrefetchScalarGridSpec(
            num_scalar_prefetch=0,
            grid=grid,
            in_specs=[
                pl.BlockSpec((tm, tk), lambda i, j, k: (i, k)),   # x
                pl.BlockSpec((tk, tn), lambda i, j, k: (k, j)),   # W^T
                pl.BlockSpec((1, tn), lambda i, j, k: (0, j)),    # bias
                pl.BlockSpec((Hp, R), lambda i, j, k: (0, 0)),    # A^T (resident)
                pl.BlockSpec((R, tn), lambda i, j, k: (0, j)),    # scaled B^T
            ],
            out_specs=pl.BlockSpec((tm, tn), lambda i, j, k: (i, j)),
            scratch_shapes=[
                pltpu.VMEM((tm, tn), jnp.float32),    # base accumulator
                pltpu.VMEM((tm, R), jnp.float32),     # x @ A^T accumulator
                pltpu.VMEM((tm, R), jnp.bfloat16),    # cached bf16 x @ A^T
            ],
        ),
        compiler_params=pltpu.CompilerParams(
            # j must stay "arbitrary": the ax scratch is produced at j == 0 and
            # consumed at j > 0 (sequential dependence along the N axis).
            # i is "parallel" so megacore shards M tiles across TensorCores.
            dimension_semantics=("parallel", "arbitrary", "arbitrary"),
        ),
    )(x_p, prep["wT"], prep["bias"], prep["aT"], prep["bT"])

    out = out[:M, :O]
    return out.reshape(*orig_shape[:-1], O)


def lora_bf16_linear(x, base_weight, base_bias, lora_a, lora_b, scaling,
                     *, tm=None, tn=None, tk=None):
    """Convenience wrapper on raw weights.

    x: [..., H]; base_weight: [O, H]; base_bias: [O]; lora_a: [R, H];
    lora_b: [O, R]. For repeated calls, hoist prepare_lora_bf16_weights()
    and call lora_bf16_linear_prepared() instead.
    """
    prep = prepare_lora_bf16_weights(base_weight, base_bias, lora_a, lora_b,
                                     scaling, tn=tn, tk=tk)
    return lora_bf16_linear_prepared(x, prep, tm=tm)


def lora_bf16_linear_ref(x, base_weight, base_bias, lora_a, lora_b, scaling):
    """Pure-JAX reference mirroring the PyTorch autocast-bf16 forward."""
    x = x.astype(jnp.bfloat16)
    w = base_weight.astype(jnp.bfloat16)
    b = base_bias.astype(jnp.bfloat16)
    a = lora_a.astype(jnp.bfloat16)
    bb = lora_b.astype(jnp.bfloat16)
    base = (jnp.dot(x, w.T, preferred_element_type=jnp.float32)
            + b.astype(jnp.float32)).astype(jnp.bfloat16)
    ax = jnp.dot(x, a.T, preferred_element_type=jnp.float32).astype(jnp.bfloat16)
    lora = (jnp.dot(ax, bb.T, preferred_element_type=jnp.float32)
            * scaling).astype(jnp.bfloat16)
    return base + lora


if __name__ == "__main__":
    # Shapes implied by the module: Linear(hidden -> out) with a rank-r adapter.
    batch, seq, hidden, out_features, r, lora_alpha = 2, 8, 32, 32, 8, 16
    scaling = lora_alpha / r  # use_rslora=False

    key = jax.random.PRNGKey(0)
    kx, kw, kb, ka, kB = jax.random.split(key, 5)

    x = jax.random.normal(kx, (batch, seq, hidden), dtype=jnp.float32)
    base_weight = 0.1 * jax.random.normal(kw, (out_features, hidden), jnp.float32)
    base_bias = 0.1 * jax.random.normal(kb, (out_features,), jnp.float32)
    # NOTE: init_lora_weights=True would make lora_B zeros (adapter contributes 0);
    # use non-zero deterministic values so the LoRA path is actually exercised.
    lora_a = 0.1 * jax.random.normal(ka, (r, hidden), jnp.float32)
    lora_b = 0.1 * jax.random.normal(kB, (out_features, r), jnp.float32)

    # Weight prep is hoistable: prepare once, apply many times.
    prep = prepare_lora_bf16_weights(base_weight, base_bias, lora_a, lora_b, scaling)
    out = lora_bf16_linear_prepared(x, prep)
    out = jax.block_until_ready(out)

    x2d = x.reshape(batch * seq, hidden)
    ref = lora_bf16_linear_ref(x2d, base_weight, base_bias, lora_a, lora_b, scaling)
    ref = ref.reshape(batch, seq, out_features)

    assert out.shape == (batch, seq, out_features)
    assert out.dtype == jnp.bfloat16
    assert jnp.allclose(out.astype(jnp.float32), ref.astype(jnp.float32),
                        atol=2e-2, rtol=2e-2), "mismatch vs reference"

    print("KERNEL_OK")
</pallas_src>

<mosaic_0001>
module attributes {stable_mosaic.version = 11 : i64} {
  func.func @_lora_bf16_linear_kernel(%arg0: i32, %arg1: i32, %arg2: i32, %arg3: memref<16x256xbf16, #tpu.memory_space<vmem>>, %arg4: memref<256x256xbf16, #tpu.memory_space<vmem>>, %arg5: memref<1x256xbf16, #tpu.memory_space<vmem>>, %arg6: memref<256x8xbf16, #tpu.memory_space<vmem>>, %arg7: memref<8x256xbf16, #tpu.memory_space<vmem>>, %arg8: memref<16x256xbf16, #tpu.memory_space<vmem>>, %arg9: memref<16x256xf32, #tpu.memory_space<vmem>>, %arg10: memref<16x8xf32, #tpu.memory_space<vmem>>, %arg11: memref<16x8xbf16, #tpu.memory_space<vmem>>) attributes {dimension_semantics = [#tpu.dimension_semantics<parallel>, #tpu.dimension_semantics<arbitrary>, #tpu.dimension_semantics<arbitrary>], iteration_bounds = array<i64: 1, 1, 1>, scalar_prefetch = 0 : i64, scratch_operands = 3 : i64, tpu.core_type = #tpu.core_type<tc>, window_params = [{transform_indices = @transform_0, window_bounds = array<i64: 16, 256>}, {transform_indices = @transform_1, window_bounds = array<i64: 256, 256>}, {transform_indices = @transform_2, window_bounds = array<i64: 1, 256>}, {pipeline_mode = #tpu.pipeline_mode<synchronous>, transform_indices = @transform_3, window_bounds = array<i64: 256, 8>}, {transform_indices = @transform_4, window_bounds = array<i64: 8, 256>}, {transform_indices = @transform_5, window_bounds = array<i64: 16, 256>}]} {
    %c0_i32 = arith.constant 0 : i32
    %0 = arith.cmpi eq, %arg2, %c0_i32 : i32
    %1 = arith.extui %0 : i1 to i32
    %c0_i32_0 = arith.constant 0 : i32
    %2 = arith.cmpi ne, %1, %c0_i32_0 : i32
    scf.if %2 {
      %cst_18 = arith.constant 0.000000e+00 : f32
      %25 = vector.broadcast %cst_18 : f32 to vector<16x256xf32>
      %c0_19 = arith.constant 0 : index
      %c0_20 = arith.constant 0 : index
      %26 = vector.load %arg9[%c0_19, %c0_20] : memref<16x256xf32, #tpu.memory_space<vmem>>, vector<16x256xf32>
      tpu.vector_store %arg9[%c0_19, %c0_20], %25 {strides = array<i32>} : memref<16x256xf32, #tpu.memory_space<vmem>>, vector<16x256xf32>,
    } else {
    }
    %c0_i32_1 = arith.constant 0 : i32
    %3 = arith.cmpi eq, %arg1, %c0_i32_1 : i32
    %c0_i32_2 = arith.constant 0 : i32
    %4 = arith.cmpi eq, %arg2, %c0_i32_2 : i32
    %5 = arith.andi %3, %4 : i1
    %6 = arith.extui %5 : i1 to i32
    %c0_i32_3 = arith.constant 0 : i32
    %7 = arith.cmpi ne, %6, %c0_i32_3 : i32
    scf.if %7 {
      %cst_18 = arith.constant 0.000000e+00 : f32
      %25 = vector.broadcast %cst_18 : f32 to vector<16x8xf32>
      %c0_19 = arith.constant 0 : index
      %c0_20 = arith.constant 0 : index
      %26 = vector.load %arg10[%c0_19, %c0_20] : memref<16x8xf32, #tpu.memory_space<vmem>>, vector<16x8xf32>
      tpu.vector_store %arg10[%c0_19, %c0_20], %25 {strides = array<i32>} : memref<16x8xf32, #tpu.memory_space<vmem>>, vector<16x8xf32>,
    } else {
    }
    %c0 = arith.constant 0 : index
    %c0_4 = arith.constant 0 : index
    %8 = vector.load %arg3[%c0, %c0_4] : memref<16x256xbf16, #tpu.memory_space<vmem>>, vector<16x256xbf16>
    %c0_5 = arith.constant 0 : index
    %c0_6 = arith.constant 0 : index
    %9 = vector.load %arg9[%c0_5, %c0_6] : memref<16x256xf32, #tpu.memory_space<vmem>>, vector<16x256xf32>
    %c0_7 = arith.constant 0 : index
    %c0_8 = arith.constant 0 : index
    %10 = vector.load %arg4[%c0_7, %c0_8] : memref<256x256xbf16, #tpu.memory_space<vmem>>, vector<256x256xbf16>
    %cst = arith.constant dense<0.000000e+00> : vector<16x256xf32>
    %11 = tpu.matmul %8, %10, %cst {dimension_numbers = #tpu.dot_dimension_numbers<[1], [0], [0], [1], [0, 0, 1, 1], [], []>} : vector<16x256xbf16>, vector<256x256xbf16>, vector<16x256xf32> -> vector<16x256xf32>
    %12 = arith.addf %9, %11 : vector<16x256xf32>
    %c0_9 = arith.constant 0 : index
    %c0_10 = arith.constant 0 : index
    %13 = vector.load %arg9[%c0_9, %c0_10] : memref<16x256xf32, #tpu.memory_space<vmem>>, vector<16x256xf32>
    tpu.vector_store %arg9[%c0_9, %c0_10], %12 {strides = array<i32>} : memref<16x256xf32, #tpu.memory_space<vmem>>, vector<16x256xf32>,
    %c0_i32_11 = arith.constant 0 : i32
    %14 = arith.cmpi eq, %arg1, %c0_i32_11 : i32
    %15 = arith.extui %14 : i1 to i32
    %c0_i32_12 = arith.constant 0 : i32
    %16 = arith.cmpi ne, %15, %c0_i32_12 : i32
    scf.if %16 {
      %c256_i32 = arith.constant 256 : i32
      %25 = arith.muli %arg2, %c256_i32 : i32
      %26 = tpu.assume_multiple %25, 256 : i32
      %27 = arith.index_cast %26 : i32 to index
      %c0_18 = arith.constant 0 : index
      %28 = vector.load %arg6[%27, %c0_18] : memref<256x8xbf16, #tpu.memory_space<vmem>>, vector<256x8xbf16>
      %c0_19 = arith.constant 0 : index
      %c0_20 = arith.constant 0 : index
      %29 = vector.load %arg10[%c0_19, %c0_20] : memref<16x8xf32, #tpu.memory_space<vmem>>, vector<16x8xf32>
      %cst_21 = arith.constant dense<0.000000e+00> : vector<16x8xf32>
      %30 = tpu.matmul %8, %28, %cst_21 {dimension_numbers = #tpu.dot_dimension_numbers<[1], [0], [0], [1], [0, 0, 1, 1], [], []>} : vector<16x256xbf16>, vector<256x8xbf16>, vector<16x8xf32> -> vector<16x8xf32>
      %31 = arith.addf %29, %30 : vector<16x8xf32>
      %c0_22 = arith.constant 0 : index
      %c0_23 = arith.constant 0 : index
      %32 = vector.load %arg10[%c0_22, %c0_23] : memref<16x8xf32, #tpu.memory_space<vmem>>, vector<16x8xf32>
      tpu.vector_store %arg10[%c0_22, %c0_23], %31 {strides = array<i32>} : memref<16x8xf32, #tpu.memory_space<vmem>>, vector<16x8xf32>,
    } else {
    }
    %c0_i32_13 = arith.constant 0 : i32
    %17 = arith.cmpi eq, %arg1, %c0_i32_13 : i32
    %c0_i32_14 = arith.constant 0 : i32
    %18 = arith.cmpi eq, %arg2, %c0_i32_14 : i32
    %19 = arith.andi %17, %18 : i1
    %20 = arith.extui %19 : i1 to i32
    %c0_i32_15 = arith.constant 0 : i32
    %21 = arith.cmpi ne, %20, %c0_i32_15 : i32
    scf.if %21 {
      %c0_18 = arith.constant 0 : index
      %c0_19 = arith.constant 0 : index
      %25 = vector.load %arg10[%c0_18, %c0_19] : memref<16x8xf32, #tpu.memory_space<vmem>>, vector<16x8xf32>
      %26 = arith.truncf %25 : vector<16x8xf32> to vector<16x8xbf16>
      %c0_20 = arith.constant 0 : index
      %c0_21 = arith.constant 0 : index
      %27 = vector.load %arg11[%c0_20, %c0_21] : memref<16x8xbf16, #tpu.memory_space<vmem>>, vector<16x8xbf16>
      tpu.vector_store %arg11[%c0_20, %c0_21], %26 {strides = array<i32>} : memref<16x8xbf16, #tpu.memory_space<vmem>>, vector<16x8xbf16>,
    } else {
    }
    %c0_i32_16 = arith.constant 0 : i32
    %22 = arith.cmpi eq, %arg2, %c0_i32_16 : i32
    %23 = arith.extui %22 : i1 to i32
    %c0_i32_17 = arith.constant 0 : i32
    %24 = arith.cmpi ne, %23, %c0_i32_17 : i32
    scf.if %24 {
      %c0_18 = arith.constant 0 : index
      %c0_19 = arith.constant 0 : index
      %25 = vector.load %arg11[%c0_18, %c0_19] : memref<16x8xbf16, #tpu.memory_space<vmem>>, vector<16x8xbf16>
      %c0_20 = arith.constant 0 : index
      %c0_21 = arith.constant 0 : index
      %26 = vector.load %arg7[%c0_20, %c0_21] : memref<8x256xbf16, #tpu.memory_space<vmem>>, vector<8x256xbf16>
      %cst_22 = arith.constant dense<0.000000e+00> : vector<16x256xf32>
      %27 = tpu.matmul %25, %26, %cst_22 {dimension_numbers = #tpu.dot_dimension_numbers<[1], [0], [0], [1], [0, 0, 1, 1], [], []>} : vector<16x8xbf16>, vector<8x256xbf16>, vector<16x256xf32> -> vector<16x256xf32>
      %c0_23 = arith.constant 0 : index
      %c0_24 = arith.constant 0 : index
      %28 = vector.load %arg9[%c0_23, %c0_24] : memref<16x256xf32, #tpu.memory_space<vmem>>, vector<16x256xf32>
      %c0_25 = arith.constant 0 : index
      %c0_26 = arith.constant 0 : index
      %29 = vector.load %arg5[%c0_25, %c0_26] : memref<1x256xbf16, #tpu.memory_space<vmem>>, vector<1x256xbf16>
      %30 = arith.extf %29 : vector<1x256xbf16> to vector<1x256xf32>
      %31 = vector.broadcast %30 : vector<1x256xf32> to vector<16x256xf32>
      %32 = arith.addf %28, %31 : vector<16x256xf32>
      %33 = arith.addf %32, %27 : vector<16x256xf32>
      %34 = arith.truncf %33 : vector<16x256xf32> to vector<16x256xbf16>
      %c0_27 = arith.constant 0 : index
      %c0_28 = arith.constant 0 : index
      %35 = vector.load %arg8[%c0_27, %c0_28] : memref<16x256xbf16, #tpu.memory_space<vmem>>, vector<16x256xbf16>
      tpu.vector_store %arg8[%c0_27, %c0_28], %34 {strides = array<i32>} : memref<16x256xbf16, #tpu.memory_space<vmem>>, vector<16x256xbf16>,
    } else {
    }
    return
  }
  func.func @transform_0(%arg0: i32, %arg1: i32, %arg2: i32) -> (i32, i32) {
    %c0_i32 = arith.constant 0 : i32
    return %arg0, %arg2 : i32, i32
  }
  func.func @transform_1(%arg0: i32, %arg1: i32, %arg2: i32) -> (i32, i32) {
    %c0_i32 = arith.constant 0 : i32
    return %arg2, %arg1 : i32, i32
  }
  func.func @transform_2(%arg0: i32, %arg1: i32, %arg2: i32) -> (i32, i32) {
    %c0_i32 = arith.constant 0 : i32
    %c0_i32_0 = arith.constant 0 : i32
    return %c0_i32, %arg1 : i32, i32
  }
  func.func @transform_3(%arg0: i32, %arg1: i32, %arg2: i32) -> (i32, i32) {
    %c0_i32 = arith.constant 0 : i32
    %c0_i32_0 = arith.constant 0 : i32
    %c0_i32_1 = arith.constant 0 : i32
    return %c0_i32, %c0_i32_0 : i32, i32
  }
  func.func @transform_4(%arg0: i32, %arg1: i32, %arg2: i32) -> (i32, i32) {
    %c0_i32 = arith.constant 0 : i32
    %c0_i32_0 = arith.constant 0 : i32
    return %c0_i32, %arg1 : i32, i32
  }
  func.func @transform_5(%arg0: i32, %arg1: i32, %arg2: i32) -> (i32, i32) {
    %c0_i32 = arith.constant 0 : i32
    return %arg0, %arg1 : i32, i32
  }
}

</mosaic_0001>

<bundles_post_ra>
// kernel: tpu_custom_call.1
= control target key start
LH: loop header
LB: loop body
LE: loop exit
PB: predicated region body
PF: predicated region fallthrough
CT: control target
= control target key end

     0   :  { %10 = vsyncpa [#allocation6], 0  ;;  %s968_s0 = inlined_call_operand.vmem [shape: bf16[16,256], index: 0, kind: input, shape index: {}]   ;;  %s969_s1 = inlined_call_operand.hbm [shape: bf16[256,256], index: 1, kind: input, shape index: {}]   ;;  %s970_s2 = inlined_call_operand.vmem [shape: bf16[1,256], index: 2, kind: input, shape index: {}]   ;;  %s971_s3 = inlined_call_operand.vmem [shape: bf16[256,8], index: 3, kind: input, shape index: {}]   ;;  %s972_s4 = inlined_call_operand.vmem [shape: bf16[8,256], index: 4, kind: input, shape index: {}]   ;;  %s973_s5 = inlined_call_operand.hbm [shape: bf16[16,256], index: 5, kind: output, shape index: {}]  }
   0x1   :  { %11 = vsyncpa [#allocation7], 0  ;;  %s851_s18 = smov [#allocation5]  }
   0x2   :  { %s19_s19 = sshll.u32 %s851_s18, 4  ;;  %s20_s19 = int_to_ptr.vmem [resolvable:$true] %s19_s19 }
   0x3   :  { %s815_s20 = scalar_lea.vmem %s20_s19, 4096  ;;  %p820_p1 = scmp.lt.s32.totalorder %s20_s19, %s20_s19 }
   0x4   :  { %p816_p0 = scmp.ne.s32.totalorder %s20_s19, %s815_s20  ;;  %p821_p2 = scmp.lt.s32.totalorder %s815_s20, %s815_s20 }
   0x6   :  { %p822_p3 = por %p821_p2, %p820_p1 }
   0x8   :  { %p823_p4 = pnand %p822_p3, %p816_p0 }
   0xa   :  { %826 = shalt.err (!%p823_p4)
}
   0xb   :  { %s852_s21 = smov 128   ;;  %s853_s22 = smov 8  }
   0xc   :  { %25 = dma.hbm_to_vmem [thread:$0]  %s969_s1, 4096, %s20_s19, [#allocation6], %s852_s21, %s852_s21, %s853_s22  }
   0xd   :  { %847 = dma.done.wait [#allocation6], 4096  }
   0xe   :  { %848 = vsyncadd [#allocation6], 4294963200  ;;  %v737_v0 = vld [vmem:[%s971_s3 + $0x78] sm:$0xff]   ;;  %v739_v2 = vld [vmem:[%s971_s3 + $0x70] sm:$0xff]   ;;  %vm49_vm0 = vcmask 64512   ;;  %v854_v40 = vmov 0.0  }
   0xf   :  { %v738_v1 = vld [vmem:[%s971_s3 + $0x38] sm:$0xff]   ;;  %709 = vmatprep.subr.bf16.mxu1 %v737_v0  ;;  %v740_v3 = vld [vmem:[%s971_s3 + $0x30] sm:$0xff]   ;;  %v741_v4 = vld [vmem:[%s971_s3 + $0x68] sm:$0xff]   ;;  %50 = vst.msk [vmem:[#allocation3] sm:$0xff] %vm49_vm0, %v854_v40  ;;  %vm530_vm1 = vcmask 1043456   ;;  %v855_v54 = vmov 0  }
  0x10   :  { %710 = vmatpush3.bf16.msra.mxu1 %v738_v1  ;;  %v742_v5 = vld [vmem:[%s971_s3 + $0x28] sm:$0xff]   ;;  %v743_v6 = vld [vmem:[%s971_s3 + $0x60] sm:$0xff]   ;;  %v745_v8 = vld [vmem:[%s971_s3 + $0x58] sm:$0xff]   ;;  %51 = vst.msk [vmem:[#allocation3 + $0x8] sm:$0xff] %vm49_vm0, %v854_v40  ;;  %vm507_vm2 = vcmask 60416  }
  0x11   :  { %711 = vmatprep.subr.bf16.mxu1 %v739_v2  ;;  %v744_v7 = vld [vmem:[%s971_s3 + $0x20] sm:$0xff]   ;;  %v746_v9 = vld [vmem:[%s971_s3 + $0x18] sm:$0xff]   ;;  %v747_v10 = vld [vmem:[%s971_s3 + $0x50] sm:$0xff]  }
  0x12   :  { %v755_v11 = vld [vmem:[%s968_s0 + $0x4] ss:$8 sps:$4 sm:$0xff]   ;;  %v758_v13 = vld [vmem:[#allocation5 + $0x70] ss:$8 sps:$4 sm:$0xff]   ;;  %v761_v17 = vld [vmem:[#allocation5 + $0x60] ss:$8 sps:$4 sm:$0xff]  }
  0x13   :  { %v756_v12 = vld [vmem:[#allocation5 + $0x74] ss:$8 sps:$4 sm:$0xff]   ;;  %481 = vmatprep.mubr.bf16.mxu1 %v755_v11  ;;  %v759_v15 = vld [vmem:[#allocation5 + $0x64] ss:$8 sps:$4 sm:$0xff]   ;;  %292 = vmatprep.mubr.bf16.mxu0 %v755_v11  ;;  %v764_v21 = vld [vmem:[#allocation5 + $0x50] ss:$8 sps:$4 sm:$0xff]  }
  0x14   :  { %712 = vmatpush3.bf16.msra.mxu1 %v740_v3  ;;  %v748_v14 = vld [vmem:[%s971_s3 + $0x10] sm:$0xff]   ;;  %v749_v16 = vld [vmem:[%s971_s3 + $0x48] sm:$0xff]   ;;  %260 = vmatprep.subr.bf16.mxu0 %v756_v12  ;;  %v751_v20 = vld [vmem:[%s971_s3 + $0x40] sm:$0xff]  }
  0x15   :  { %713 = vmatprep.subr.bf16.mxu1 %v741_v4  ;;  %261 = vmatpush1.bf16.msra.mxu0 %v758_v13  ;;  %v762_v18 = vld [vmem:[#allocation5 + $0x54] ss:$8 sps:$4 sm:$0xff]   ;;  %v765_v22 = vld [vmem:[#allocation5 + $0x44] ss:$8 sps:$4 sm:$0xff]   ;;  %v767_v24 = vld [vmem:[#allocation5 + $0x40] ss:$8 sps:$4 sm:$0xff]  }
  0x16   :  { %262 = vmatprep.subr.bf16.mxu0 %v759_v15  ;;  %v750_v19 = vld [vmem:[%s971_s3 + $0x8] sm:$0xff]   ;;  %v752_v23 = vld [vmem:[%s971_s3] sm:$0xff]  }
  0x17   :  { %v947_v25 = vld [vmem:[%s968_s0] ss:$8 sps:$4 sm:$0xff]   ;;  %v768_v26 = vld [vmem:[#allocation5 + $0x34] ss:$8 sps:$4 sm:$0xff]   ;;  %v771_v28 = vld [vmem:[#allocation5 + $0x24] ss:$8 sps:$4 sm:$0xff]  }
  0x18   :  { %714 = vmatpush3.bf16.msra.mxu1 %v742_v5  ;;  %v770_v27 = vld [vmem:[#allocation5 + $0x30] ss:$8 sps:$4 sm:$0xff]   ;;  %v773_v29 = vld [vmem:[#allocation5 + $0x20] ss:$8 sps:$4 sm:$0xff]   ;;  %v774_v30 = vld [vmem:[#allocation5 + $0x14] ss:$8 sps:$4 sm:$0xff]  }
  0x19   :  { %715 = vmatprep.subr.bf16.mxu1 %v743_v6  ;;  %263 = vmatpush1.bf16.msra.mxu0 %v761_v17  ;;  %v776_v31 = vld [vmem:[#allocation5 + $0x10] ss:$8 sps:$4 sm:$0xff]   ;;  %v777_v32 = vld [vmem:[#allocation5 + $0x4] ss:$8 sps:$4 sm:$0xff]   ;;  %v779_v33 = vld [vmem:[#allocation5] ss:$8 sps:$4 sm:$0xff]  }
  0x1a   :  { %264 = vmatprep.subr.bf16.mxu0 %v762_v18  ;;  %v780_v34 = vld [vmem:[#allocation5 + $0xf4] ss:$8 sps:$4 sm:$0xff]   ;;  %v782_v35 = vld [vmem:[#allocation5 + $0xf0] ss:$8 sps:$4 sm:$0xff]   ;;  %v783_v36 = vld [vmem:[#allocation5 + $0xe4] ss:$8 sps:$4 sm:$0xff]  }
  0x1b   :  { %v785_v37 = vld [vmem:[#allocation5 + $0xe0] ss:$8 sps:$4 sm:$0xff]   ;;  %v786_v38 = vld [vmem:[#allocation5 + $0xd4] ss:$8 sps:$4 sm:$0xff]   ;;  %v788_v39 = vld [vmem:[#allocation5 + $0xd0] ss:$8 sps:$4 sm:$0xff]  }
  0x1c   :  { %716 = vmatpush3.bf16.msra.mxu1 %v744_v7  ;;  %v789_v41 = vld [vmem:[#allocation5 + $0xc4] ss:$8 sps:$4 sm:$0xff]   ;;  %v791_v42 = vld [vmem:[#allocation5 + $0xc0] ss:$8 sps:$4 sm:$0xff]   ;;  %v792_v43 = vld [vmem:[#allocation5 + $0xb4] ss:$8 sps:$4 sm:$0xff]   ;;  %v587_v7 = vlaneseq }
  0x1d   :  { %717 = vmatprep.subr.bf16.mxu1 %v745_v8  ;;  %265 = vmatpush1.bf16.msra.mxu0 %v764_v21  ;;  %v794_v44 = vld [vmem:[#allocation5 + $0xb0] ss:$8 sps:$4 sm:$0xff]   ;;  %v795_v45 = vld [vmem:[#allocation5 + $0xa4] ss:$8 sps:$4 sm:$0xff]   ;;  %v797_v46 = vld [vmem:[#allocation5 + $0xa0] ss:$8 sps:$4 sm:$0xff]  }
  0x1e   :  { %266 = vmatprep.subr.bf16.mxu0 %v765_v22  ;;  %v798_v47 = vld [vmem:[#allocation5 + $0x94] ss:$8 sps:$4 sm:$0xff]   ;;  %v800_v48 = vld [vmem:[#allocation5 + $0x90] ss:$8 sps:$4 sm:$0xff]   ;;  %v801_v49 = vld [vmem:[#allocation5 + $0x84] ss:$8 sps:$4 sm:$0xff]  }
  0x1f   :  { %v803_v50 = vld [vmem:[#allocation5 + $0x80] ss:$8 sps:$4 sm:$0xff]   ;;  %v352_v62 = vld [vmem:[#allocation3 + $0x8] sm:$0xff]  ;;  %v588_v8 = vshrl.u32 %v587_v7, 7 }
  0x20   :  { %718 = vmatpush3.bf16.msra.mxu1 %v746_v9  ;;  %v515_v51 = vld [vmem:[%s972_s4] sm:$0xff] }
  0x21   :  { %719 = vmatprep.subr.bf16.mxu1 %v747_v10  ;;  %267 = vmatpush1.bf16.msra.mxu0 %v767_v24  ;;  %v700_v52 = vcombine.high %v515_v51, %v515_v51  ;;  %v699_v53 = vcombine.low %v515_v51, %v515_v51  ;;  %v351_v57 = vld [vmem:[#allocation3] sm:$0xff]  ;;  %v589_v11 = vsub.s32 0, %v588_v8  ;;  %v593_v12 = vsub.s32 2, %v588_v8 }
  0x22   :  { %268 = vmatprep.subr.bf16.mxu0 %v768_v26  ;;  %v584_v9 = vld [vmem:[%s970_s2] sm:$0x3]  ;;  %s856_s2 = smov [#allocation8]  }
  0x23   :  { %v532_v55 = vsel %vm530_vm1, %v699_v53, 0  ;;  %v585_v10 = vunpack.c.l.bf16 %v584_v9  ;;  %s632_s12 = sshll.u32 %s856_s2, 4  ;;  %s633_s12 = int_to_ptr.vmem [resolvable:$true] %s632_s12 }
  0x24   :  { %720 = vmatpush3.bf16.msra.mxu1 %v748_v14  ;;  %s827_s13 = scalar_lea.vmem %s633_s12, 256  ;;  %p832_p6 = scmp.lt.s32.totalorder %s633_s12, %s633_s12 }
  0x25   :  { %721 = vmatprep.subr.bf16.mxu1 %v749_v16  ;;  %269 = vmatpush1.bf16.msra.mxu0 %v770_v27  ;;  %v590_v14 = vrot.slane %v585_v10, %v589_v11  ;;  %v594_v15 = vrot.slane %v585_v10, %v593_v12  ;;  %p828_p5 = scmp.ne.s32.totalorder %s633_s12, %s827_s13  ;;  %p833_p7 = scmp.lt.s32.totalorder %s827_s13, %s827_s13 }
  0x26   :  { %270 = vmatprep.subr.bf16.mxu0 %v771_v28 }
  0x27   :  { %v600_v17 = vrot.slane %v590_v14, %v589_v11  ;;  %v604_v18 = vrot.slane %v594_v15, %v589_v11  ;;  %p834_p8 = por %p833_p7, %p832_p6 }
  0x28   :  { %722 = vmatpush3.bf16.msra.mxu1 %v750_v19 }
  0x29   :  { %723 = vmatprep.subr.bf16.mxu1 %v751_v20  ;;  %271 = vmatpush1.bf16.msra.mxu0 %v773_v29  ;;  %p835_p9 = pnand %p834_p8, %p828_p5 }
  0x2a   :  { %272 = vmatprep.subr.bf16.mxu0 %v774_v30 }
  0x2c   :  { %724 = vmatpush3.bf16.msra.mxu1 %v752_v23 }
  0x2d   :  { %273 = vmatpush1.bf16.msra.mxu0 %v776_v31  ;;  %701 = vmatprep.subr.msk.bf16.mxu1 %vm530_vm1, %v700_v52 }
  0x2e   :  { %274 = vmatprep.subr.bf16.mxu0 %v777_v32 }
  0x2f   :  { %482 = vmatmul.mubr.bf16.vlgmr.msra.gmra.mxu1 %v947_v25 }
  0x30   :  { %569 = vmatprep.mubr.bf16.mxu1 %v855_v54  ;;  %552 = vmatpush1.bf16.msra.mxu1 %v532_v55 }
  0x31   :  { %275 = vmatpush1.bf16.msra.mxu0 %v779_v33 }
  0x32   :  { %276 = vmatprep.subr.bf16.mxu0 %v780_v34 }
  0x35   :  { %277 = vmatpush2.bf16.msra.mxu0 %v782_v35 }
  0x36   :  { %278 = vmatprep.subr.bf16.mxu0 %v783_v36 }
  0x39   :  { %279 = vmatpush2.bf16.msra.mxu0 %v785_v37 }
  0x3a   :  { %280 = vmatprep.subr.bf16.mxu0 %v786_v38 }
  0x3d   :  { %281 = vmatpush2.bf16.msra.mxu0 %v788_v39 }
  0x3e   :  { %282 = vmatprep.subr.bf16.mxu0 %v789_v41 }
  0x41   :  { %283 = vmatpush2.bf16.msra.mxu0 %v791_v42 }
  0x42   :  { %284 = vmatprep.subr.bf16.mxu0 %v792_v43 }
  0x45   :  { %285 = vmatpush2.bf16.msra.mxu0 %v794_v44 }
  0x46   :  { %286 = vmatprep.subr.bf16.mxu0 %v795_v45 }
  0x49   :  { %287 = vmatpush2.bf16.msra.mxu0 %v797_v46 }
  0x4a   :  { %288 = vmatprep.subr.bf16.mxu0 %v798_v47 }
  0x4d   :  { %289 = vmatpush2.bf16.msra.mxu0 %v800_v48 }
  0x4e   :  { %290 = vmatprep.subr.bf16.mxu0 %v801_v49 }
  0x51   :  { %291 = vmatpush2.bf16.msra.mxu0 %v803_v50 }
  0x54   :  { %293 = vmatmul.mubr.bf16.vlgmr.msra.gmra.mxu0 %v947_v25 }
  0xef   :  { %v725_v56 = vpop.f32.mrf.mxu1 }
  0xf1   :  { %v726_v58 = vpop.f32.mrf.mxu1 }
  0xf2   :  { %v727_v59 = vadd.f32 %v726_v58, %v725_v56 }
  0xf3   :  { %v728_v60 = vpop.f32.mrf.mxu1 }
  0xf4   :  { %v490_v61 = vadd.f32 %v727_v59, %v351_v57 }
  0xf5   :  { %v729_v63 = vpop.f32.mrf.mxu1 }
  0xf6   :  { %493 = vst.msk [vmem:[#allocation3] sm:$0xff] %vm49_vm0, %v490_v61  ;;  %v730_v0 = vadd.f32 %v729_v63, %v728_v60 }
  0xf8   :  { %v491_v1 = vadd.f32 %v730_v0, %v352_v62 }
  0xfa   :  { %494 = vst.msk [vmem:[#allocation3 + $0x8] sm:$0xff] %vm49_vm0, %v491_v1 }
  0xfd   :  { %v497_v2 = vld [vmem:[#allocation3] sm:$0xff] }
  0xfe   :  { %v705_v3 = vpack.c.bf16 %v497_v2, %v497_v2 }
 0x100   :  { %508 = vst.msk [vmem:[#allocation4] sm:$0xf] %vm507_vm2, %v705_v3 }
 0x101   :  { %v498_v4 = vld [vmem:[#allocation3 + $0x8] sm:$0xff] }
 0x102   :  { %v706_v5 = vpack.c.bf16 %v498_v4, %v498_v4 }
 0x104   :  { %509 = vst.msk [vmem:[#allocation4 + $0x4] sm:$0xf] %vm507_vm2, %v706_v5 }
 0x10b   :  { %v806_v6 = vld [vmem:[#allocation4] sm:$0xff]  }
 0x10c   :  { %702 = vmatmul.mubr.msk.bf16.vlgmr.msra.gmra.mxu1 %vm49_vm0, %v806_v6 }
 0x114   :  { %v294_v13 = vpop.f32.mrf.mxu0 }
 0x115   :  { %v605_v20 = vadd.f32 %v600_v17, %v294_v13 }
 0x116   :  { %v296_v16 = vpop.f32.mrf.mxu0 }
 0x117   :  { %v606_v22 = vadd.f32 %v604_v18, %v296_v16 }
 0x118   :  { %v298_v19 = vpop.f32.mrf.mxu0 }
 0x119   :  { %v607_v28 = vadd.f32 %v600_v17, %v298_v19 }
 0x11a   :  { %v300_v23 = vpop.f32.mrf.mxu0 }
 0x11b   :  { %v608_v29 = vadd.f32 %v604_v18, %v300_v23 }
 0x1cc   :  { %v571_v21 = vpop.f32.mrf.mxu1 }
 0x1cd   :  { %v609_v25 = vadd.f32 %v605_v20, %v571_v21 }
 0x1ce   :  { %v573_v24 = vpop.f32.mrf.mxu1 }
 0x1cf   :  { %v610_v26 = vadd.f32 %v606_v22, %v573_v24 }
 0x1d0   :  { %v575_v27 = vpop.f32.mrf.mxu1 }
 0x1d1   :  { %v707_v30 = vpack.c.bf16 %v610_v26, %v609_v25  ;;  %v611_v32 = vadd.f32 %v607_v28, %v575_v27 }
 0x1d2   :  { %v577_v31 = vpop.f32.mrf.mxu1 }
 0x1d3   :  { %625 = vst [vmem:[#allocation8] sm:$0xff] %v707_v30  ;;  %v612_v33 = vadd.f32 %v608_v29, %v577_v31 }
 0x1d5   :  { %v708_v34 = vpack.c.bf16 %v612_v33, %v611_v32 }
 0x1d7   :  { %626 = vst [vmem:[#allocation8 + $0x8] sm:$0xff] %v708_v34 }
 0x1d8   :  { %838 = shalt.err (!%p835_p9)
}
 0x1d9   :  { %638 = dma.vmem_to_hbm [thread:$0]  %s633_s12, 256, %s973_s5, [#allocation7], %s852_s21, %s852_s21, %s853_s22  }
 0x1da   :  { %849 = dma.done.wait [#allocation7], 256  }
 0x1db   :  { %850 = vsyncadd [#allocation7], 4294967040 }
 0x1dc   :  { %642 = vsyncpa [#allocation6], 1 }
 0x1dd   :  { %643 = vsyncpa [#allocation7], 1 }

</bundles_post_ra>
